<compile_context>
chip_gen: v7x
topology: tpu7x:2x2x1
jax: 0.10.0
libtpu: 0.0.40
codegen_flags: <defaults>
</compile_context>

<pallas_src>
import jax
import jax.numpy as jnp
from jax.experimental import pallas as pl
from jax.experimental.pallas import tpu as pltpu


def _make_prompt_kernel(n_ctx: int):
    def prompt_kernel(prefix_ref, ctx_ref, suffix_ref, out_ref):
        # prefix_ref: (TC, 1, D)        -- per-class prefix token embeddings
        # ctx_ref:    (n_ctx, D)        -- shared learned context (VMEM-resident)
        # suffix_ref: (TC, n_suffix, D) -- per-class suffix token embeddings
        # out_ref:    (TC, seq, D)
        tc, _, d = out_ref.shape
        out_dtype = out_ref.dtype

        # Broadcast the shared ctx across the TC classes once per grid step
        # (explicit astype in case ctx dtype differs from the embedding dtype).
        ctx_b = jnp.broadcast_to(
            ctx_ref[...][None, :, :], (tc, n_ctx, d)
        ).astype(out_dtype)

        # Assemble the full tile in-register and issue a single unmasked
        # full-block store (lane- and sublane-dense), instead of three
        # sublane-unaligned partial stores.
        out_ref[...] = jnp.concatenate(
            [prefix_ref[...].astype(out_dtype), ctx_b, suffix_ref[...].astype(out_dtype)],
            axis=1,
        )

    return prompt_kernel


def auto_prompt_forward(ctx, token_prefix, token_suffix, *, classes_per_block=None):
    """Assemble CoOp prompts: concat([prefix, ctx (broadcast), suffix], axis=1)."""
    n_ctx, ctx_dim = ctx.shape
    n_cls, one, _ = token_prefix.shape
    assert one == 1
    n_suffix = token_suffix.shape[1]
    seq = 1 + n_ctx + n_suffix

    out_dtype = token_prefix.dtype
    itemsize = jnp.dtype(out_dtype).itemsize

    if classes_per_block is None:
        # Size the per-step class batch so double-buffered (prefix + suffix + out)
        # blocks stay within a conservative VMEM budget, amortizing the ~0.35 us
        # per-grid-step overhead with the largest tile that safely fits all chips.
        vmem_budget = 24 * 1024 * 1024
        per_class = (1 + n_suffix + seq) * ctx_dim * itemsize  # one pipeline stage
        classes_per_block = max(1, vmem_budget // (2 * per_class))
        classes_per_block = int(min(classes_per_block, n_cls, 128))
    tc = int(max(1, min(classes_per_block, n_cls)))

    grid = (pl.cdiv(n_cls, tc),)

    # Explicit scoped-VMEM limit derived from the actual block footprint
    # (double-buffered inputs/outputs + resident ctx) plus headroom.
    block_bytes = tc * (1 + n_suffix + seq) * ctx_dim * itemsize
    ctx_bytes = n_ctx * ctx_dim * jnp.dtype(ctx.dtype).itemsize
    vmem_limit = int(min(max(2 * (block_bytes + ctx_bytes) + (4 << 20), 16 << 20), 96 << 20))

    kernel = _make_prompt_kernel(n_ctx)

    return pl.pallas_call(
        kernel,
        out_shape=jax.ShapeDtypeStruct((n_cls, seq, ctx_dim), out_dtype),
        grid_spec=pltpu.PrefetchScalarGridSpec(
            num_scalar_prefetch=0,
            grid=grid,
            in_specs=[
                pl.BlockSpec((tc, 1, ctx_dim), lambda i: (i, 0, 0)),
                # Constant index_map -> ctx block stays VMEM-resident across steps.
                pl.BlockSpec((n_ctx, ctx_dim), lambda i: (0, 0)),
                pl.BlockSpec((tc, n_suffix, ctx_dim), lambda i: (i, 0, 0)),
            ],
            out_specs=pl.BlockSpec((tc, seq, ctx_dim), lambda i: (i, 0, 0)),
        ),
        compiler_params=pltpu.CompilerParams(
            # parallel grid axis lets v7x shard steps across its 2 TensorCores;
            # neutral on v5e/v6e.
            dimension_semantics=("parallel",),
            vmem_limit_bytes=vmem_limit,
        ),
    )(token_prefix, ctx, token_suffix)


if __name__ == "__main__":
    # Small shapes consistent with the module:
    #   n_cls classes, n_ctx=16 learned context tokens (as in __init__),
    #   ctx_dim = transformer width, seq = total prompt length.
    n_cls = 8
    n_ctx = 16
    ctx_dim = 128
    seq = 32                       # CLIP uses 77; shrunk for the test
    n_suffix = seq - 1 - n_ctx     # 15
    dtype = jnp.float32

    key = jax.random.PRNGKey(0)
    k_ctx, k_emb = jax.random.split(key)

    # nn.init.normal_(ctx_vectors, std=0.02)
    ctx = (0.02 * jax.random.normal(k_ctx, (n_ctx, ctx_dim))).astype(dtype)

    # Synthetic stand-in for clip_model.token_embedding(tokenized_prompts):
    # deterministic random embedding table output, [n_cls, seq, ctx_dim].
    embedding = jax.random.normal(k_emb, (n_cls, seq, ctx_dim)).astype(dtype)
    token_prefix = embedding[:, :1, :]                 # [n_cls, 1, D]
    token_suffix = embedding[:, 1 + n_ctx:, :]         # [n_cls, n_suffix, D]

    # classes_per_block=4 -> grid=(2,): exercises both class batching and
    # multiple (megacore-shardable) grid steps at this small test size.
    prompts = auto_prompt_forward(ctx, token_prefix, token_suffix, classes_per_block=4)
    prompts = jax.block_until_ready(prompts)

    # Reference check (plain JAX): concat([prefix, ctx broadcast, suffix], axis=1)
    ctx_b = jnp.broadcast_to(ctx[None], (n_cls, n_ctx, ctx_dim))
    ref = jnp.concatenate([token_prefix, ctx_b, token_suffix], axis=1)
    assert prompts.shape == (n_cls, seq, ctx_dim)
    assert jnp.allclose(prompts, ref), "Pallas output mismatch vs reference"

    print("KERNEL_OK")
</pallas_src>

<mosaic_0001>
module attributes {stable_mosaic.version = 11 : i64} {
  func.func @prompt_kernel(%arg0: i32, %arg1: memref<4x1x128xf32, #tpu.memory_space<vmem>>, %arg2: memref<16x128xf32, #tpu.memory_space<vmem>>, %arg3: memref<4x15x128xf32, #tpu.memory_space<vmem>>, %arg4: memref<4x32x128xf32, #tpu.memory_space<vmem>>) attributes {dimension_semantics = [#tpu.dimension_semantics<parallel>], iteration_bounds = array<i64: 2>, scalar_prefetch = 0 : i64, scratch_operands = 0 : i64, tpu.core_type = #tpu.core_type<tc>, window_params = [{transform_indices = @transform_0, window_bounds = array<i64: 4, 1, 128>}, {pipeline_mode = #tpu.pipeline_mode<synchronous>, transform_indices = @transform_1, window_bounds = array<i64: 16, 128>}, {transform_indices = @transform_2, window_bounds = array<i64: 4, 15, 128>}, {transform_indices = @transform_3, window_bounds = array<i64: 4, 32, 128>}]} {
    %c0 = arith.constant 0 : index
    %c0_0 = arith.constant 0 : index
    %0 = vector.load %arg2[%c0, %c0_0] : memref<16x128xf32, #tpu.memory_space<vmem>>, vector<16x128xf32>
    %1 = vector.shape_cast %0 : vector<16x128xf32> to vector<1x16x128xf32>
    %2 = vector.shape_cast %1 : vector<1x16x128xf32> to vector<1x16x128xf32>
    %3 = vector.broadcast %2 : vector<1x16x128xf32> to vector<4x16x128xf32>
    %c0_1 = arith.constant 0 : index
    %c0_2 = arith.constant 0 : index
    %c0_3 = arith.constant 0 : index
    %4 = vector.load %arg1[%c0_1, %c0_2, %c0_3] : memref<4x1x128xf32, #tpu.memory_space<vmem>>, vector<4x1x128xf32>
    %c0_4 = arith.constant 0 : index
    %c0_5 = arith.constant 0 : index
    %c0_6 = arith.constant 0 : index
    %5 = vector.load %arg3[%c0_4, %c0_5, %c0_6] : memref<4x15x128xf32, #tpu.memory_space<vmem>>, vector<4x15x128xf32>
    %6 = tpu.concatenate %4, %3, %5 in 1 : vector<4x1x128xf32>, vector<4x16x128xf32>, vector<4x15x128xf32> -> vector<4x32x128xf32>
    %c0_7 = arith.constant 0 : index
    %c0_8 = arith.constant 0 : index
    %c0_9 = arith.constant 0 : index
    %7 = vector.load %arg4[%c0_7, %c0_8, %c0_9] : memref<4x32x128xf32, #tpu.memory_space<vmem>>, vector<4x32x128xf32>
    tpu.vector_store %arg4[%c0_7, %c0_8, %c0_9], %6 {strides = array<i32>} : memref<4x32x128xf32, #tpu.memory_space<vmem>>, vector<4x32x128xf32>,
    return
  }
  func.func @transform_0(%arg0: i32) -> (i32, i32, i32) {
    %c0_i32 = arith.constant 0 : i32
    %c0_i32_0 = arith.constant 0 : i32
    %c0_i32_1 = arith.constant 0 : i32
    return %arg0, %c0_i32, %c0_i32_0 : i32, i32, i32
  }
  func.func @transform_1(%arg0: i32) -> (i32, i32) {
    %c0_i32 = arith.constant 0 : i32
    %c0_i32_0 = arith.constant 0 : i32
    %c0_i32_1 = arith.constant 0 : i32
    return %c0_i32, %c0_i32_0 : i32, i32
  }
  func.func @transform_2(%arg0: i32) -> (i32, i32, i32) {
    %c0_i32 = arith.constant 0 : i32
    %c0_i32_0 = arith.constant 0 : i32
    %c0_i32_1 = arith.constant 0 : i32
    return %arg0, %c0_i32, %c0_i32_0 : i32, i32, i32
  }
  func.func @transform_3(%arg0: i32) -> (i32, i32, i32) {
    %c0_i32 = arith.constant 0 : i32
    %c0_i32_0 = arith.constant 0 : i32
    %c0_i32_1 = arith.constant 0 : i32
    return %arg0, %c0_i32, %c0_i32_0 : i32, i32, i32
  }
}

</mosaic_0001>

<bundles_post_ra>
// kernel: tpu_custom_call.1
= control target key start
LH: loop header
LB: loop body
LE: loop exit
PB: predicated region body
PF: predicated region fallthrough
CT: control target
= control target key end

     0   :  { %8 = vsyncpa [#allocation3], 0  ;;  %s652_s0 = inlined_call_operand.vmem [shape: f32[8,1,128], index: 0, kind: input, shape index: {}]   ;;  %s653_s1 = inlined_call_operand.vmem [shape: f32[16,128], index: 1, kind: input, shape index: {}]   ;;  %s654_s2 = inlined_call_operand.vmem [shape: f32[8,15,128], index: 2, kind: input, shape index: {}]   ;;  %s655_s3 = inlined_call_operand.hbm [shape: f32[8,32,128], index: 3, kind: output, shape index: {}]  }
   0x1   :  { %10 = vsyncpa [#allocation3 + $0x1], 0  ;;  %s501_s12 = smov 0   ;;  %s503_s13 = smov 0  }
   0x2   :  { %s505_s14 = smov 0   ;;  %s507_s15 = smov 0  }
   0x3 LB: > { %s522_s16 = sadd.s32 4294967295, %s476_s15   ;;  %s355_s17 = sadd.s32 4294967294, %s476_s15   ;;  %s476_s15 = sphi %s507_s15, %s661_s15   ;;  %s472_s14 = sphi %s505_s14, %s660_s14   ;;  %s468_s13 = sphi %s503_s13, %s659_s13   ;;  %s464_s12 = sphi %s501_s12, %s658_s12  }
   0x4   : > { %s526_s18 = sadd.s32 1, %s476_s15   ;;  %s96_s19 = sadd.s32 1, %s472_s14 }
   0x5   : > { %s93_s20 = ssub.s32 %s476_s15, %s526_s18  ;;  %p106_p0 = scmp.ne.s32.totalorder %s472_s14, %s468_s13 }
   0x6   : > { %p94_p1 = scmp.eq.s32.totalorder %s93_s20, 0  ;;  %p107_p2 = scmp.eq.s32.totalorder %s522_s16, 1 }
   0x7   : > { %p112_p3 = scmp.ne.s32.totalorder %s468_s13, %s464_s12  ;;  %p113_p4 = scmp.eq.s32.totalorder %s355_s17, 1 }
   0x8   : > { %s537_s21 = scalar_select %p94_p1, %s472_s14, %s96_s19  }
   0x9   : > { %p539_p5 = por %p107_p2, %p106_p0  ;;  %p543_p6 = por %p113_p4, %p112_p3 }
   0xa   : > { %p358_p7 = scmp.ge.s32.totalorder %s476_s15, 1  ;;  %p152_p8 = scmp.lt.s32.totalorder %s476_s15, 3 }
   0xc   : > { %p153_p9 = pnand %p358_p7, %p152_p8 }
   0xd   : > { %s178_s24 = sand.u32 (!%p153_p9), 1, %s468_s13   ;;  %s360_s25 = sshll.u32 (!%p153_p9), %s522_s16, 2  ;;  %v194_v0 = vld [vmem:[%s653_s1] sm:$0xff] (!%p153_p9)  ;;  %vm210_vm0 = vcmask (!%p153_p9), 1040384   ;;  %v195_v1 = vld [vmem:[%s653_s1 + $0x8] sm:$0xff] (!%p153_p9) }
   0xe   : > { %156 = sbr.rel (%p153_p9) target bundleno = 47 (0x2f), region = 32  ;;  %s359_s30 = sshll.u32 (!%p153_p9), %s178_s24, 7  ;;  %v211_v2 = vrot.slane (!%p153_p9), %v194_v0, 7  ;;  %v212_v3 = vrot.slane (!%p153_p9), %v195_v1, 7 }
   0xf   : > { %p182_p10 = scmp.lt.s32.totalorder (!%p153_p9), %s360_s25, 7  ;;  %s560_s4 = scalar_lea.vmem (!%p153_p9), [#allocation2], %s359_s30 }
  0x10   : > { %v213_v4 = vsel (!%p153_p9), %vm210_vm0, %v211_v2, %v212_v3  ;;  %s372_s17 = sshll.u32 (!%p153_p9), %s522_s16, 11  ;;  %s284_s19 = sshll.u32 (!%p153_p9), %s560_s4, 4  ;;  %s602_s19 = int_to_ptr.vmem [resolvable:$true] %s284_s19 }
  0x11   : > { %254 = vst [vmem:[%s560_s4 + $0x8] sm:$0xff] (!%p153_p9), %v213_v4  ;;  %258 = vst [vmem:[%s560_s4 + $0x28] sm:$0xff] (!%p153_p9), %v213_v4  ;;  %s598_s26 = scalar_lea.hbm (!%p153_p9), %s655_s3, %s372_s17  ;;  %s611_s16 = scalar_lea.sflag (!%p153_p9), [#allocation3], %s178_s24 }
  0x12   : > { %262 = vst [vmem:[%s560_s4 + $0x48] sm:$0xff] (!%p153_p9), %v213_v4  ;;  %266 = vst [vmem:[%s560_s4 + $0x68] sm:$0xff] (!%p153_p9), %v213_v4  ;;  %s414_s27 = scalar_lea.vmem (!%p153_p9), %s602_s19, 2048  ;;  %s478_s28 = smov (!%p153_p9), [#allocation2]  }
  0x13   : > { %p415_p11 = scmp.ne.s32.totalorder (!%p153_p9), %s602_s19, %s414_s27  ;;  %s418_s29 = sshll.u32 (!%p153_p9), %s478_s28, 4  ;;  %s419_s29 = int_to_ptr.vmem [resolvable:$false] %s418_s29 }
  0x14   : > { %s420_s30 = scalar_lea.vmem (!%p153_p9), %s419_s29, 4096  ;;  %p421_p0 = scmp.lt.s32.totalorder (!%p153_p9), %s602_s19, %s419_s29 }
  0x15   : > { %s663_s25 = smov (!%p182_p10, %s360_s25), 7  ;;  %p416_p12 = pnand %p415_p11, %p539_p5 }
  0x16   : > { %s184_s7 = scalar_lea.vmem %s652_s0, %s663_s25  ;;  %s370_s8 = sshll.u32 %s663_s25, 4 }
  0x17   : > { %s191_s11 = scalar_lea.vmem %s654_s2, %s370_s8  ;;  %v196_v5 = vld [vmem:[%s184_s7] sm:$0x1]  ;;  %v197_v6 = vld [vmem:[%s184_s7 + $0x1] sm:$0x1]  ;;  %v198_v7 = vld [vmem:[%s184_s7 + $0x2] sm:$0x1]  ;;  %p417_p13 = pneg %p416_p12 }
  0x18   : > { %v245_v8 = vsel %vm210_vm0, %v196_v5, %v211_v2  ;;  %v200_v9 = vld [vmem:[%s191_s11] sm:$0xff]  ;;  %v201_v10 = vld [vmem:[%s191_s11 + $0x8] sm:$0x7f]  ;;  %v246_v11 = vsel %vm210_vm0, %v197_v6, %v211_v2  ;;  %v202_v12 = vld [vmem:[%s191_s11 + $0x10] sm:$0xff]  ;;  %v247_v13 = vsel %vm210_vm0, %v198_v7, %v211_v2  ;;  %p422_p1 = scmp.lt.s32.totalorder %s420_s30, %s414_s27 }
  0x19   : > { %253 = vst [vmem:[%s560_s4] sm:$0xff] %v245_v8  ;;  %v225_v14 = vrot.slane %v200_v9, 7  ;;  %v226_v15 = vrot.slane %v201_v10, 7  ;;  %257 = vst [vmem:[%s560_s4 + $0x20] sm:$0xff] %v246_v11  ;;  %v228_v16 = vrot.slane %v202_v12, 7  ;;  %v203_v17 = vld [vmem:[%s191_s11 + $0x18] sm:$0x7f] }
  0x1a   : > { %261 = vst [vmem:[%s560_s4 + $0x40] sm:$0xff] %v247_v13  ;;  %v204_v18 = vld [vmem:[%s191_s11 + $0x20] sm:$0xff]  ;;  %v229_v19 = vrot.slane %v203_v17, 7  ;;  %v205_v21 = vld [vmem:[%s191_s11 + $0x28] sm:$0x7f]  ;;  %v206_v27 = vld [vmem:[%s191_s11 + $0x30] sm:$0xff]  ;;  %p423_p2 = por %p422_p1, %p421_p0 }
  0x1b   : > { %v231_v20 = vrot.slane %v204_v18, 7  ;;  %v199_v22 = vld [vmem:[%s184_s7 + $0x3] sm:$0x1]  ;;  %v249_v23 = vsel %vm210_vm0, %v212_v3, %v225_v14  ;;  %v227_v24 = vsel %vm210_vm0, %v225_v14, %v226_v15  ;;  %v250_v25 = vsel %vm210_vm0, %v212_v3, %v228_v16  ;;  %v207_v28 = vld [vmem:[%s191_s11 + $0x38] sm:$0x7f] }
  0x1c   : > { %v232_v26 = vrot.slane %v205_v21, 7  ;;  %255 = vst [vmem:[%s560_s4 + $0x10] sm:$0xff] %v249_v23  ;;  %256 = vst [vmem:[%s560_s4 + $0x18] sm:$0xff] %v227_v24  ;;  %v230_v29 = vsel %vm210_vm0, %v228_v16, %v229_v19  ;;  %v248_v31 = vsel %vm210_vm0, %v199_v22, %v211_v2  ;;  %v234_v32 = vrot.slane %v206_v27, 7  ;;  %p424_p3 = pnand %p423_p2, %p417_p13 }
  0x1d   : > { %259 = vst [vmem:[%s560_s4 + $0x30] sm:$0xff] %v250_v25  ;;  %v251_v30 = vsel %vm210_vm0, %v212_v3, %v231_v20  ;;  %260 = vst [vmem:[%s560_s4 + $0x38] sm:$0xff] %v230_v29  ;;  %v235_v34 = vrot.slane %v207_v28, 7 }
  0x1e   : > { %263 = vst [vmem:[%s560_s4 + $0x50] sm:$0xff] %v251_v30  ;;  %v233_v33 = vsel %vm210_vm0, %v231_v20, %v232_v26  ;;  %265 = vst [vmem:[%s560_s4 + $0x60] sm:$0xff] %v248_v31  ;;  %v252_v35 = vsel %vm210_vm0, %v212_v3, %v234_v32 }
  0x1f   : > { %264 = vst [vmem:[%s560_s4 + $0x58] sm:$0xff] %v233_v33  ;;  %267 = vst [vmem:[%s560_s4 + $0x70] sm:$0xff] %v252_v35  ;;  %v236_v36 = vsel %vm210_vm0, %v234_v32, %v235_v34 }
  0x20   : > { %268 = vst [vmem:[%s560_s4 + $0x78] sm:$0xff] %v236_v36 }
  0x21   : > { %427 = shalt.err (!%p424_p3)
}
  0x22   : > { %s428_s24 = scalar_lea.hbm %s598_s26, 2048  ;;  %s432_s6 = scalar_lea.hbm %s655_s3, 4096 }
  0x23   : > { %p429_p4 = scmp.ne.s32.totalorder %s598_s26, %s428_s24  ;;  %p433_p9 = scmp.lt.u32.totalorder %s598_s26, %s655_s3 }
  0x24   : > { %p434_p10 = scmp.lt.u32.totalorder %s432_s6, %s428_s24  ;;  %p436_p12 = scmp.lt.u32.totalorder %s428_s24, %s598_s26 }
  0x25   : > { %p430_p7 = pnand %p429_p4, %p539_p5 }
  0x26   : > { %p435_p11 = por %p434_p10, %p433_p9 }
  0x27   : > { %p431_p8 = pneg %p430_p7 }
  0x28   : > { %p437_p13 = por %p436_p12, %p435_p11 }
  0x2a   : > { %p438_p0 = pnand %p437_p13, %p431_p8 }
  0x2c   : > { %441 = shalt.err (!%p438_p0)
}
  0x2d   : > { %s479_s9 = smov 128   ;;  %s480_s10 = smov 8  }
  0x2e   : > { %373 = dma.vmem_to_hbm [thread:$0]  (%p539_p5), %s602_s19, 2048, %s598_s26, %s611_s16, %s479_s9, %s479_s9, %s480_s10  }
  0x2f PF: > { %p379_p1 = scmp.ge.s32.totalorder %s476_s15, 2  ;;  %s299_s11 = sand.u32 1, %s464_s12  }
  0x30   : > { %s300_s17 = scalar_lea.sflag [#allocation3], %s299_s11 }
  0x31   : > { %p376_p2 = pnand %p379_p1, %p543_p6 }
  0x33   : > { %459 = dma.done.wait (!%p376_p2), %s300_s17, 2048  }
  0x34   : > { %461 = vsyncadd (!%p376_p2), %s300_s17, 4294965248  ;;  %p13_p3 = scmp.ge.s32.totalorder %s526_s18, 4   ;;  %s658_s12 = smov %s468_s13 }
  0x35   : > { %s659_s13 = smov %s472_s14  ;;  %s660_s14 = smov %s537_s21 }
  0x36   : > { %s661_s15 = smov %s526_s18  ;;  %15 = sbr.rel (!%p13_p3) target bundleno = 3 (0x3), region = 70 }
  0x3d   :  { %305 = vsyncpa [#allocation3], 1 }
  0x3e   :  { %307 = vsyncpa [#allocation3 + $0x1], 1 }

</bundles_post_ra>
